<compile_context>
chip_gen: v5e
topology: v5e:2x2
jax: 0.10.0
libtpu: 0.0.40
codegen_flags: <defaults>
</compile_context>

<pallas_src>
import functools
from typing import NamedTuple, Optional

import jax
import jax.numpy as jnp
from jax.experimental import pallas as pl
from jax.experimental.pallas import tpu as pltpu


class EncoderOutput(NamedTuple):
    projected_vec: jnp.ndarray
    masked_projected_vec: Optional[jnp.ndarray]


# ----------------------------- tiling helpers -----------------------------

def _pick_tile(dim, target, align):
    """Largest tile <= target that divides dim and is a multiple of `align`;
    falls back to the full dim (always legal: block == full array dim)."""
    if dim <= target:
        return dim
    t = (min(target, dim) // align) * align
    while t >= align:
        if dim % t == 0:
            return t
        t -= align
    return dim


# Tile targets sized so double-buffered bf16 tiles + the f32 accumulator stay
# well below even v7x's 32 MiB default scoped VMEM (no vmem_limit_bytes needed).
_TM, _TN, _TK = 256, 256, 512
_TM_LN = 512
_MAX_FUSED_N = 2048   # widest output row kept resident for the fused linear+LN


# ----------------------------- Pallas kernels -----------------------------

def _linear_kernel(x_ref, w_ref, b_ref, o_ref, acc_ref, *, activation):
    """Tiled matmul: bf16 x/w inputs, f32 accumulation, fused bias (+gelu)."""
    @pl.when(pl.program_id(2) == 0)
    def _init():
        acc_ref[...] = jnp.zeros_like(acc_ref)

    acc_ref[...] += jnp.dot(x_ref[...], w_ref[...],
                            preferred_element_type=jnp.float32)

    @pl.when(pl.program_id(2) == pl.num_programs(2) - 1)
    def _finalize():
        y = acc_ref[...] + b_ref[...]
        if activation == "gelu":
            y = jax.nn.gelu(y)        # tanh approx (see TODO at top)
        o_ref[...] = y.astype(o_ref.dtype)


def linear_pallas(x, w, b, activation=None):
    """x: (M, K), w: (K, N), b: (N,) -> (M, N) float32."""
    M, K = x.shape
    _, N = w.shape
    tm = _pick_tile(M, _TM, 16)       # bf16 sublane packing
    tn = _pick_tile(N, _TN, 128)
    tk = _pick_tile(K, _TK, 128)
    grid = (M // tm, N // tn, K // tk)
    xb = x.astype(jnp.bfloat16)
    wb = w.astype(jnp.bfloat16)
    return pl.pallas_call(
        functools.partial(_linear_kernel, activation=activation),
        out_shape=jax.ShapeDtypeStruct((M, N), jnp.float32),
        grid=grid,
        in_specs=[
            pl.BlockSpec((tm, tk), lambda i, j, k: (i, k)),
            pl.BlockSpec((tk, tn), lambda i, j, k: (k, j)),
            pl.BlockSpec((1, tn), lambda i, j, k: (0, j)),
        ],
        out_specs=pl.BlockSpec((tm, tn), lambda i, j, k: (i, j)),
        scratch_shapes=[pltpu.VMEM((tm, tn), jnp.float32)],
        compiler_params=pltpu.CompilerParams(
            dimension_semantics=("parallel", "parallel", "arbitrary")),
    )(xb, wb, b.reshape(1, N).astype(jnp.float32))


def _linear_ln_kernel(x_ref, w_ref, b_ref, r_ref, g_ref, bb_ref, o_ref,
                      acc_ref, *, eps):
    """Tiled matmul with fused bias + residual add + layernorm in the finalize.

    Requires the full output row (N) to live in one tile so the LN reduction is
    local to the block."""
    @pl.when(pl.program_id(1) == 0)
    def _init():
        acc_ref[...] = jnp.zeros_like(acc_ref)

    acc_ref[...] += jnp.dot(x_ref[...], w_ref[...],
                            preferred_element_type=jnp.float32)

    @pl.when(pl.program_id(1) == pl.num_programs(1) - 1)
    def _finalize():
        y = acc_ref[...] + b_ref[...] + r_ref[...]
        mu = jnp.mean(y, axis=-1, keepdims=True)
        var = jnp.mean(jnp.square(y - mu), axis=-1, keepdims=True)
        o_ref[...] = ((y - mu) * jax.lax.rsqrt(var + eps) * g_ref[...]
                      + bb_ref[...]).astype(o_ref.dtype)


def linear_ln_pallas(x, w, b, residual, gamma, beta, eps=1e-12):
    """layernorm(x @ w + b + residual).  Full-N tile; falls back if N too wide."""
    M, K = x.shape
    _, N = w.shape
    if N > _MAX_FUSED_N:
        # TODO(synk): very wide outputs fall back to unfused linear + layernorm.
        return layernorm_pallas(linear_pallas(x, w, b), residual, gamma, beta, eps)
    tm = _pick_tile(M, _TM, 16)
    tk = _pick_tile(K, _TK, 128)
    grid = (M // tm, K // tk)
    xb = x.astype(jnp.bfloat16)
    wb = w.astype(jnp.bfloat16)
    return pl.pallas_call(
        functools.partial(_linear_ln_kernel, eps=eps),
        out_shape=jax.ShapeDtypeStruct((M, N), jnp.float32),
        grid=grid,
        in_specs=[
            pl.BlockSpec((tm, tk), lambda i, k: (i, k)),
            pl.BlockSpec((tk, N), lambda i, k: (k, 0)),
            pl.BlockSpec((1, N), lambda i, k: (0, 0)),
            pl.BlockSpec((tm, N), lambda i, k: (i, 0)),   # residual (k-invariant)
            pl.BlockSpec((1, N), lambda i, k: (0, 0)),
            pl.BlockSpec((1, N), lambda i, k: (0, 0)),
        ],
        out_specs=pl.BlockSpec((tm, N), lambda i, k: (i, 0)),
        scratch_shapes=[pltpu.VMEM((tm, N), jnp.float32)],
        compiler_params=pltpu.CompilerParams(
            dimension_semantics=("parallel", "arbitrary")),
    )(xb, wb, b.reshape(1, N).astype(jnp.float32),
      residual, gamma.reshape(1, N), beta.reshape(1, N))


def _layernorm_kernel(x_ref, g_ref, b_ref, o_ref, *, eps):
    """LayerNorm over the last dim (standalone, used for the embedding LN)."""
    x = x_ref[...]
    mu = jnp.mean(x, axis=-1, keepdims=True)
    var = jnp.mean(jnp.square(x - mu), axis=-1, keepdims=True)
    o_ref[...] = (x - mu) * jax.lax.rsqrt(var + eps) * g_ref[...] + b_ref[...]


def layernorm_pallas(x, residual, gamma, beta, eps=1e-12):
    """x: (M, D) -> layernorm(x [+ residual]) over the last dim."""
    if residual is not None:
        x = x + residual          # only hit on the wide-N fallback path
    M, D = x.shape
    tm = _pick_tile(M, _TM_LN, 8)
    return pl.pallas_call(
        functools.partial(_layernorm_kernel, eps=eps),
        out_shape=jax.ShapeDtypeStruct((M, D), jnp.float32),
        grid=(M // tm,),
        in_specs=[
            pl.BlockSpec((tm, D), lambda i: (i, 0)),
            pl.BlockSpec((1, D), lambda i: (0, 0)),
            pl.BlockSpec((1, D), lambda i: (0, 0)),
        ],
        out_specs=pl.BlockSpec((tm, D), lambda i: (i, 0)),
        compiler_params=pltpu.CompilerParams(dimension_semantics=("parallel",)),
    )(x, gamma.reshape(1, D), beta.reshape(1, D))


def _attention_kernel(qkv_ref, m_ref, o_ref, *, heads, scale):
    """All heads of one batch element. qkv block: (1, S, 3D); mask: (1, 1, S)."""
    _, S, D3 = qkv_ref.shape
    D = D3 // 3
    dh = D // heads
    qkv = qkv_ref[0]                                   # (S, 3D) f32
    bias = (1.0 - m_ref[0]) * jnp.float32(-1e9)        # (1, S) key mask bias
    # Static per-head loop: each head is a lane slice of the fused QKV block
    # (no HBM transposes / no materialized (B*H,S,S) mask).
    ctxs = []
    for h in range(heads):
        q = qkv[:, h * dh:(h + 1) * dh].astype(jnp.bfloat16)            # (S, dh)
        k = qkv[:, D + h * dh:D + (h + 1) * dh].astype(jnp.bfloat16)    # (S, dh)
        v = qkv[:, 2 * D + h * dh:2 * D + (h + 1) * dh].astype(jnp.bfloat16)
        s = jax.lax.dot_general(q, k, (((1,), (1,)), ((), ())),
                                preferred_element_type=jnp.float32)      # (S, S)
        s = s * scale + bias
        s = s - jnp.max(s, axis=-1, keepdims=True)
        p = jnp.exp(s)
        p = p * pl.reciprocal(jnp.sum(p, axis=-1, keepdims=True), approx=True)
        ctxs.append(jnp.dot(p.astype(jnp.bfloat16), v,
                            preferred_element_type=jnp.float32))         # (S, dh)
    # One lane-dense (S, D) store instead of per-head partial stores.
    o_ref[0] = jnp.concatenate(ctxs, axis=-1).astype(o_ref.dtype)


def attention_pallas(qkv, attention_mask, heads, scale):
    """qkv: (B, S, 3D) fused projections; attention_mask: (B, S) {0,1}."""
    B, S, D3 = qkv.shape
    D = D3 // 3
    m = attention_mask.astype(jnp.float32).reshape(B, 1, S)
    return pl.pallas_call(
        functools.partial(_attention_kernel, heads=heads, scale=scale),
        out_shape=jax.ShapeDtypeStruct((B, S, D), jnp.float32),
        grid=(B,),
        in_specs=[
            pl.BlockSpec((1, S, D3), lambda b: (b, 0, 0)),
            pl.BlockSpec((1, 1, S), lambda b: (b, 0, 0)),
        ],
        out_specs=pl.BlockSpec((1, S, D), lambda b: (b, 0, 0)),
        compiler_params=pltpu.CompilerParams(dimension_semantics=("parallel",)),
    )(qkv, m)


def _pool_kernel(x_ref, m_ref, o_ref, *, method):
    x = x_ref[0]                       # (S, D)
    m = m_ref[0]                       # (S, 1)
    if method == "mean":
        summed = jnp.sum(x * m, axis=0, keepdims=True)                 # (1, D)
        counts = jnp.maximum(jnp.sum(m, axis=0, keepdims=True), 1e-9)  # (1, 1)
        o_ref[0] = summed / counts
    else:  # "max"
        neg = jnp.finfo(jnp.float32).min
        o_ref[0] = jnp.max(jnp.where(m > 0, x, neg), axis=0, keepdims=True)


def pool_pallas(x, mask, method):
    """x: (B, S, D); mask: (B, S) {0,1} -> (B, D)."""
    B, S, D = x.shape
    m = mask.astype(jnp.float32).reshape(B, S, 1)
    out = pl.pallas_call(
        functools.partial(_pool_kernel, method=method),
        out_shape=jax.ShapeDtypeStruct((B, 1, D), jnp.float32),
        grid=(B,),
        in_specs=[
            pl.BlockSpec((1, S, D), lambda b: (b, 0, 0)),
            pl.BlockSpec((1, S, 1), lambda b: (b, 0, 0)),
        ],
        out_specs=pl.BlockSpec((1, 1, D), lambda b: (b, 0, 0)),
        compiler_params=pltpu.CompilerParams(dimension_semantics=("parallel",)),
    )(x, m)
    return out.reshape(B, D)


# ----------------------------- pure-JAX reference ops -----------------------------
# (same bf16-operand / f32-accumulation convention so the comparison is apples-to-apples)

def linear_ref(x, w, b, activation=None):
    y = jnp.dot(x.astype(jnp.bfloat16), w.astype(jnp.bfloat16),
                preferred_element_type=jnp.float32) + b
    if activation == "gelu":
        y = jax.nn.gelu(y)
    return y


def layernorm_ref(x, residual, gamma, beta, eps=1e-12):
    if residual is not None:
        x = x + residual
    mu = jnp.mean(x, axis=-1, keepdims=True)
    var = jnp.mean(jnp.square(x - mu), axis=-1, keepdims=True)
    return (x - mu) * jax.lax.rsqrt(var + eps) * gamma + beta


def linear_ln_ref(x, w, b, residual, gamma, beta, eps=1e-12):
    return layernorm_ref(linear_ref(x, w, b), residual, gamma, beta, eps)


def attention_ref(qkv, attention_mask, heads, scale):
    B, S, D3 = qkv.shape
    D = D3 // 3
    dh = D // heads

    def split(t):
        return t.reshape(B, S, heads, dh).transpose(0, 2, 1, 3).astype(jnp.bfloat16)

    q, k, v = split(qkv[..., :D]), split(qkv[..., D:2 * D]), split(qkv[..., 2 * D:])
    s = jnp.einsum("bhqd,bhkd->bhqk", q, k,
                   preferred_element_type=jnp.float32) * scale
    bias = (1.0 - attention_mask.astype(jnp.float32))[:, None, None, :] * -1e9
    p = jax.nn.softmax(s + bias, axis=-1)
    ctx = jnp.einsum("bhqk,bhkd->bhqd", p.astype(jnp.bfloat16), v,
                     preferred_element_type=jnp.float32)
    return ctx.transpose(0, 2, 1, 3).reshape(B, S, D)


def pool_ref(x, mask, method):
    m = mask.astype(jnp.float32)[..., None]
    if method == "mean":
        return jnp.sum(x * m, axis=1) / jnp.maximum(jnp.sum(m, axis=1), 1e-9)
    masked = jnp.where(m > 0, x, jnp.finfo(jnp.float32).min)
    return jnp.max(masked, axis=1)


# ----------------------------- parameters -----------------------------

def init_params(key, *, vocab, max_pos, d, ffn, proj, n_layers):
    keys = jax.random.split(key, 4 + n_layers)

    def norm(k, shape):
        return 0.02 * jax.random.normal(k, shape, jnp.float32)

    params = {
        "word_emb": norm(keys[0], (vocab, d)),
        "pos_emb": norm(keys[1], (max_pos, d)),
        "emb_ln_g": jnp.ones((d,), jnp.float32),
        "emb_ln_b": jnp.zeros((d,), jnp.float32),
        "proj_w": norm(keys[2], (d, proj)),
        "proj_b": jnp.zeros((proj,), jnp.float32),
        "layers": [],
    }
    for l in range(n_layers):
        lk = jax.random.split(keys[4 + l], 6)
        params["layers"].append({
            "wq": norm(lk[0], (d, d)), "bq": jnp.zeros((d,), jnp.float32),
            "wk": norm(lk[1], (d, d)), "bk": jnp.zeros((d,), jnp.float32),
            "wv": norm(lk[2], (d, d)), "bv": jnp.zeros((d,), jnp.float32),
            "wo": norm(lk[3], (d, d)), "bo": jnp.zeros((d,), jnp.float32),
            "ln1_g": jnp.ones((d,), jnp.float32), "ln1_b": jnp.zeros((d,), jnp.float32),
            "w1": norm(lk[4], (d, ffn)), "b1": jnp.zeros((ffn,), jnp.float32),
            "w2": norm(lk[5], (ffn, d)), "b2": jnp.zeros((d,), jnp.float32),
            "ln2_g": jnp.ones((d,), jnp.float32), "ln2_b": jnp.zeros((d,), jnp.float32),
        })
    return params


# ----------------------------- ExpertTextEncoder.forward -----------------------------

def expert_text_encoder_forward(params, x, *, heads, embed_method, ops):
    linear = ops["linear"]
    linear_ln = ops["linear_ln"]
    layernorm = ops["layernorm"]
    attention = ops["attention"]
    pool = ops["pool"]

    ids = x["input_ids"]
    am = x["attention_mask"].astype(jnp.float32)      # (B, S)
    B, S = ids.shape
    D = params["word_emb"].shape[1]
    dh = D // heads
    scale = 1.0 / float(dh) ** 0.5

    # ----- self.base(**x).last_hidden_state  (BERT-style encoder) -----
    h = params["word_emb"][ids] + params["pos_emb"][jnp.arange(S)][None, :, :]
    h = h.reshape(B * S, D)
    h = layernorm(h, None, params["emb_ln_g"], params["emb_ln_b"])

    for lp in params["layers"]:
        # fused QKV projection: one (D, 3D) matmul instead of three (D, D)
        wqkv = jnp.concatenate([lp["wq"], lp["wk"], lp["wv"]], axis=1)   # (D, 3D)
        bqkv = jnp.concatenate([lp["bq"], lp["bk"], lp["bv"]])           # (3D,)
        qkv = linear(h, wqkv, bqkv)                                      # (B*S, 3D)
        ctx = attention(qkv.reshape(B, S, 3 * D), am, heads, scale)      # (B, S, D)
        # output projection fused with ln(attn_out + h)
        h = linear_ln(ctx.reshape(B * S, D), lp["wo"], lp["bo"],
                      h, lp["ln1_g"], lp["ln1_b"])
        mid = linear(h, lp["w1"], lp["b1"], activation="gelu")
        # second FFN matmul fused with ln(ffn_out + h)
        h = linear_ln(mid, lp["w2"], lp["b2"], h, lp["ln2_g"], lp["ln2_b"])

    out_last = h.reshape(B, S, D)                      # last_hidden_state (B, S, D)

    # ----- embed_method pooling -----
    if embed_method == "cls":
        out = out_last[:, 0, :]
    elif embed_method == "mean":
        out = pool(out_last, am, "mean")
    elif embed_method == "max":
        out = pool(out_last, am, "max")
    else:
        raise ValueError(
            f"Supported embed methods are 'cls' and 'mean', {embed_method} was passed")

    # ----- projector -----
    projected_vec = linear(out, params["proj_w"], params["proj_b"])

    # snippet path unused in forward -> masked_projected_vec is None
    return EncoderOutput(projected_vec=projected_vec, masked_projected_vec=None)


# ----------------------------- main -----------------------------

if __name__ == "__main__":
    B, S, D, HEADS, FFN, PROJ = 2, 8, 32, 4, 64, 16
    VOCAB, MAX_POS, N_LAYERS = 100, 16, 4          # n_inter_layers (3) < n_layers (4)

    key = jax.random.PRNGKey(0)
    pkey, ikey = jax.random.split(key)
    params = init_params(pkey, vocab=VOCAB, max_pos=MAX_POS, d=D,
                         ffn=FFN, proj=PROJ, n_layers=N_LAYERS)

    input_ids = jax.random.randint(ikey, (B, S), 0, VOCAB, dtype=jnp.int32)
    attention_mask = jnp.array([[1, 1, 1, 1, 1, 1, 1, 1],
                                [1, 1, 1, 1, 1, 0, 0, 0]], dtype=jnp.int32)
    x = {"input_ids": input_ids, "attention_mask": attention_mask}

    pallas_ops = {"linear": linear_pallas, "linear_ln": linear_ln_pallas,
                  "layernorm": layernorm_pallas, "attention": attention_pallas,
                  "pool": pool_pallas}
    ref_ops = {"linear": linear_ref, "linear_ln": linear_ln_ref,
               "layernorm": layernorm_ref, "attention": attention_ref,
               "pool": pool_ref}

    out = expert_text_encoder_forward(params, x, heads=HEADS,
                                      embed_method="mean", ops=pallas_ops)
    jax.block_until_ready(out.projected_vec)

    ref = expert_text_encoder_forward(params, x, heads=HEADS,
                                      embed_method="mean", ops=ref_ops)

    assert out.projected_vec.shape == (B, PROJ)
    assert out.masked_projected_vec is None
    # both paths use bf16 matmul operands with f32 accumulation; remaining delta
    # is the approx EUP reciprocal in the kernel softmax (well inside 1e-2)
    assert jnp.allclose(out.projected_vec, ref.projected_vec, atol=1e-2, rtol=1e-2), (
        "Pallas output does not match JAX reference")
    print("KERNEL_OK")
</pallas_src>

<mosaic_0001>
module attributes {stable_mosaic.version = 11 : i64} {
  func.func @_layernorm_kernel(%arg0: i32, %arg1: memref<16x32xf32, #tpu.memory_space<vmem>>, %arg2: memref<1x32xf32, #tpu.memory_space<vmem>>, %arg3: memref<1x32xf32, #tpu.memory_space<vmem>>, %arg4: memref<16x32xf32, #tpu.memory_space<vmem>>) attributes {dimension_semantics = [#tpu.dimension_semantics<parallel>], iteration_bounds = array<i64: 1>, scalar_prefetch = 0 : i64, scratch_operands = 0 : i64, tpu.core_type = #tpu.core_type<tc>, window_params = [{transform_indices = @transform_0, window_bounds = array<i64: 16, 32>}, {pipeline_mode = #tpu.pipeline_mode<synchronous>, transform_indices = @transform_1, window_bounds = array<i64: 1, 32>}, {pipeline_mode = #tpu.pipeline_mode<synchronous>, transform_indices = @transform_2, window_bounds = array<i64: 1, 32>}, {transform_indices = @transform_3, window_bounds = array<i64: 16, 32>}]} {
    %c0 = arith.constant 0 : index
    %c0_0 = arith.constant 0 : index
    %0 = vector.load %arg1[%c0, %c0_0] : memref<16x32xf32, #tpu.memory_space<vmem>>, vector<16x32xf32>
    %cst = arith.constant dense<0.000000e+00> : vector<16xf32>
    %1 = vector.multi_reduction <add>, %0, %cst [1] : vector<16x32xf32> to vector<16xf32>
    %2 = vector.shape_cast %1 : vector<16xf32> to vector<16x1xf32>
    %cst_1 = arith.constant 3.200000e+01 : f32
    %3 = vector.broadcast %cst_1 : f32 to vector<16x1xf32>
    %4 = arith.divf %2, %3 : vector<16x1xf32>
    %5 = vector.broadcast %4 : vector<16x1xf32> to vector<16x32xf32>
    %6 = arith.subf %0, %5 : vector<16x32xf32>
    %7 = arith.mulf %6, %6 : vector<16x32xf32>
    %cst_2 = arith.constant dense<0.000000e+00> : vector<16xf32>
    %8 = vector.multi_reduction <add>, %7, %cst_2 [1] : vector<16x32xf32> to vector<16xf32>
    %9 = vector.shape_cast %8 : vector<16xf32> to vector<16x1xf32>
    %cst_3 = arith.constant 3.200000e+01 : f32
    %10 = vector.broadcast %cst_3 : f32 to vector<16x1xf32>
    %11 = arith.divf %9, %10 : vector<16x1xf32>
    %12 = vector.broadcast %4 : vector<16x1xf32> to vector<16x32xf32>
    %13 = arith.subf %0, %12 : vector<16x32xf32>
    %cst_4 = arith.constant 9.99999996E-13 : f32
    %14 = vector.broadcast %cst_4 : f32 to vector<16x1xf32>
    %15 = arith.addf %11, %14 : vector<16x1xf32>
    %16 = math.rsqrt %15 : vector<16x1xf32>
    %17 = vector.broadcast %16 : vector<16x1xf32> to vector<16x32xf32>
    %18 = arith.mulf %13, %17 : vector<16x32xf32>
    %c0_5 = arith.constant 0 : index
    %c0_6 = arith.constant 0 : index
    %19 = vector.load %arg2[%c0_5, %c0_6] : memref<1x32xf32, #tpu.memory_space<vmem>>, vector<1x32xf32>
    %20 = vector.broadcast %19 : vector<1x32xf32> to vector<16x32xf32>
    %21 = arith.mulf %18, %20 : vector<16x32xf32>
    %c0_7 = arith.constant 0 : index
    %c0_8 = arith.constant 0 : index
    %22 = vector.load %arg3[%c0_7, %c0_8] : memref<1x32xf32, #tpu.memory_space<vmem>>, vector<1x32xf32>
    %23 = vector.broadcast %22 : vector<1x32xf32> to vector<16x32xf32>
    %24 = arith.addf %21, %23 : vector<16x32xf32>
    %c0_9 = arith.constant 0 : index
    %c0_10 = arith.constant 0 : index
    %25 = vector.load %arg4[%c0_9, %c0_10] : memref<16x32xf32, #tpu.memory_space<vmem>>, vector<16x32xf32>
    tpu.vector_store %arg4[%c0_9, %c0_10], %24 {strides = array<i32>} : memref<16x32xf32, #tpu.memory_space<vmem>>, vector<16x32xf32>,
    return
  }
  func.func @transform_0(%arg0: i32) -> (i32, i32) {
    %c0_i32 = arith.constant 0 : i32
    %c0_i32_0 = arith.constant 0 : i32
    return %arg0, %c0_i32 : i32, i32
  }
  func.func @transform_1(%arg0: i32) -> (i32, i32) {
    %c0_i32 = arith.constant 0 : i32
    %c0_i32_0 = arith.constant 0 : i32
    %c0_i32_1 = arith.constant 0 : i32
    return %c0_i32, %c0_i32_0 : i32, i32
  }
  func.func @transform_2(%arg0: i32) -> (i32, i32) {
    %c0_i32 = arith.constant 0 : i32
    %c0_i32_0 = arith.constant 0 : i32
    %c0_i32_1 = arith.constant 0 : i32
    return %c0_i32, %c0_i32_0 : i32, i32
  }
  func.func @transform_3(%arg0: i32) -> (i32, i32) {
    %c0_i32 = arith.constant 0 : i32
    %c0_i32_0 = arith.constant 0 : i32
    return %arg0, %c0_i32 : i32, i32
  }
}

</mosaic_0001>

<bundles_post_ra>
// kernel: tpu_custom_call.1
= control target key start
LH: loop header
LB: loop body
LE: loop exit
PB: predicated region body
PF: predicated region fallthrough
CT: control target
= control target key end

     0   :  { %8 = vsyncpa [#allocation3], 0  ;;  %s275_s0 = inlined_call_operand.hbm [shape: f32[16,32], index: 0, kind: input, shape index: {}]   ;;  %s276_s1 = inlined_call_operand.hbm [shape: f32[1,32], index: 1, kind: input, shape index: {}]   ;;  %s277_s2 = inlined_call_operand.vmem [shape: f32[1,32], index: 2, kind: input, shape index: {}]   ;;  %s278_s3 = inlined_call_operand.hbm [shape: f32[16,32], index: 3, kind: output, shape index: {}]  }
   0x1   :  { %9 = vsyncpa [#allocation6], 0 }
   0x2   :  { %10 = vsyncpa [#allocation4], 0  ;;  %s15_s14 = sshll.u32 %s275_s0, 4  ;;  %s225_s15 = smov [#allocation2]   ;;  %s16_s14 = int_to_ptr.hbm [resolvable:$true] %s15_s14 }
   0x3   :  { %s17_s16 = sshll.u32 %s225_s15, 4  ;;  %s29_s19 = sshll.u32 %s276_s1, 4  ;;  %s18_s16 = int_to_ptr.vmem [resolvable:$true] %s17_s16  ;;  %s30_s19 = int_to_ptr.hbm [resolvable:$true] %s29_s19 }
   0x4   :  { %s226_s20 = smov 128   ;;  %s227_s21 = smov 8  }
   0x5   :  { %23 = dma.hbm_to_vmem [thread:$0]  %s16_s14, 256, %s18_s16, [#allocation3], %s226_s20, %s226_s20, %s227_s21  }
   0x6   :  { %s228_s22 = smov [#allocation5]  }
   0x7   :  { %s31_s23 = sshll.u32 %s228_s22, 4  ;;  %s32_s23 = int_to_ptr.vmem [resolvable:$true] %s31_s23 }
   0x8   :  { %34 = dma.hbm_to_vmem [thread:$0]  %s30_s19, 16, %s32_s23, [#allocation6]  }
   0x9   :  { %219 = dma.done.wait [#allocation3], 256  }
   0xa   :  { %220 = vsyncadd [#allocation3], 4294967040 }
   0xb   :  { %221 = dma.done.wait [#allocation6], 16  }
   0xc   :  { %222 = vsyncadd [#allocation6], 4294967280  ;;  %vm47_vm0 = vcmask 261120   ;;  %v45_v0 = vld [vmem:[#allocation2] sm:$0xff]  ;;  %v46_v2 = vld [vmem:[#allocation2 + $0x8] sm:$0xff]  ;;  %v229_v4 = vmov 32.0  }
   0xd   :  { %v48_v1 = vsel %vm47_vm0, %v45_v0, 0.0  ;;  %v51_v3 = vsel %vm47_vm0, %v46_v2, 0.0  ;;  %141 = vrcp.f32 %v229_v4  ;;  %v139_v35 = vld [vmem:[#allocation5] ss:$0 sm:$0xff]  ;;  %v140_v39 = vld [vmem:[%s277_s2] ss:$0 sm:$0xff] }
   0xe   :  { %49 = vadd.xlane.f32.xlu0 %v48_v1  ;;  %s230_s24 = smov [#allocation7]   ;;  %s119_s28 = sshll.u32 %s278_s3, 4  ;;  %s120_s28 = int_to_ptr.hbm [resolvable:$true] %s119_s28 }
   0xf   :  { %s117_s25 = sshll.u32 %s230_s24, 4  ;;  %s118_s25 = int_to_ptr.vmem [resolvable:$true] %s117_s25 }
  0x13   :  { %v142_v5 = vpop.eup %141 }
  0x14   :  { %v55_v6 = vmul.f32 32.0, %v142_v5  ;;  %vm59_vm1 = vweird.f32 %v142_v5 }
  0x16   :  { %52 = vadd.xlane.f32.xlu0 %v51_v3  ;;  %v56_v7 = vsub.f32 1.0, %v55_v6 }
  0x18   :  { %v57_v8 = vmul.f32 %v142_v5, %v56_v7 }
  0x1a   :  { %v58_v9 = vadd.f32 %v142_v5, %v57_v8 }
  0x1c   :  { %v60_v10 = vsel %vm59_vm1, %v142_v5, %v58_v9 }
  0x81   :  { %v50_v11 = vpop.xlane.xlu0 %49 }
  0x82   :  { %v61_v12 = vmul.f32 %v60_v10, %v50_v11 }
  0x84   :  { %v63_v13 = vsub.f32 %v45_v0, %v61_v12 }
  0x86   :  { %v65_v14 = vmul.f32 %v63_v13, %v63_v13 }
  0x88   :  { %v67_v15 = vsel %vm47_vm0, %v65_v14, 0.0 }
  0x89   :  { %68 = vadd.xlane.f32.xlu1 %v67_v15  ;;  %v53_v16 = vpop.xlane.xlu0 %52 }
  0x8a   :  { %v62_v17 = vmul.f32 %v60_v10, %v53_v16 }
  0x8c   :  { %v64_v18 = vsub.f32 %v46_v2, %v62_v17 }
  0x8e   :  { %v66_v19 = vmul.f32 %v64_v18, %v64_v18 }
  0x90   :  { %v70_v20 = vsel %vm47_vm0, %v66_v19, 0.0 }
  0x91   :  { %71 = vadd.xlane.f32.xlu1 %v70_v20 }
  0xfc   :  { %v69_v21 = vpop.xlane.xlu1 %68 }
  0xfd   :  { %v73_v22 = vmul.f32 %v69_v21, %v60_v10 }
  0xff   :  { %v75_v23 = vadd.f32 1e-12, %v73_v22 }
 0x101   :  { %143 = vrsqrt.f32 %v75_v23  ;;  %vm83_vm3 = vweird.f32 %v75_v23 }
 0x104   :  { %v72_v24 = vpop.xlane.xlu1 %71 }
 0x105   :  { %v74_v25 = vmul.f32 %v72_v24, %v60_v10 }
 0x107   :  { %v144_v26 = vpop.eup %143  ;;  %v76_v27 = vadd.f32 1e-12, %v74_v25 }
 0x108   :  { %v78_v28 = vmul.f32 %v144_v26, %v75_v23  ;;  %vm84_vm2 = vweird.f32 %v144_v26 }
 0x109   :  { %145 = vrsqrt.f32 %v76_v27  ;;  %vm85_vm4 = vmor %vm83_vm3, %vm84_vm2  ;;  %vm93_vm6 = vweird.f32 %v76_v27 }
 0x10a   :  { %v79_v29 = vmul.f32 %v144_v26, %v78_v28 }
 0x10c   :  { %v80_v30 = vmul.f32 0.5, %v79_v29 }
 0x10e   :  { %v81_v31 = vsub.f32 1.5, %v80_v30 }
 0x10f   :  { %v146_v32 = vpop.eup %145 }
 0x110   :  { %v82_v33 = vmul.f32 %v144_v26, %v81_v31  ;;  %v88_v34 = vmul.f32 %v146_v32, %v76_v27  ;;  %vm94_vm5 = vweird.f32 %v146_v32 }
 0x111   :  { %vm95_vm7 = vmor %vm93_vm6, %vm94_vm5 }
 0x112   :  { %v86_v36 = vsel %vm85_vm4, %v144_v26, %v82_v33  ;;  %v89_v37 = vmul.f32 %v146_v32, %v88_v34 }
 0x113   :  { %v97_v38 = vmul.f32 %v86_v36, %v63_v13 }
 0x114   :  { %v90_v40 = vmul.f32 0.5, %v89_v37 }
 0x115   :  { %v103_v41 = vmul.f32 %v139_v35, %v97_v38 }
 0x116   :  { %v91_v42 = vsub.f32 1.5, %v90_v40 }
 0x117   :  { %v109_v43 = vadd.f32 %v140_v39, %v103_v41 }
 0x118   :  { %v92_v44 = vmul.f32 %v146_v32, %v91_v42 }
 0x119   :  { %111 = vst.msk [vmem:[#allocation7] sm:$0xff] %vm47_vm0, %v109_v43 }
 0x11a   :  { %v96_v45 = vsel %vm95_vm7, %v146_v32, %v92_v44 }
 0x11b   :  { %v98_v46 = vmul.f32 %v96_v45, %v64_v18 }
 0x11d   :  { %v104_v47 = vmul.f32 %v139_v35, %v98_v46 }
 0x11f   :  { %v110_v48 = vadd.f32 %v140_v39, %v104_v47 }
 0x121   :  { %112 = vst.msk [vmem:[#allocation7 + $0x8] sm:$0xff] %vm47_vm0, %v110_v48 }
 0x122   :  { %125 = dma.vmem_to_hbm [thread:$0]  %s118_s25, 256, %s120_s28, [#allocation4], %s226_s20, %s226_s20, %s227_s21  }
 0x123   :  { %223 = dma.done.wait [#allocation4], 256  }
 0x124   :  { %224 = vsyncadd [#allocation4], 4294967040 }
 0x125   :  { %130 = vsyncpa [#allocation3], 1 }
 0x126   :  { %131 = vsyncpa [#allocation6], 1 }
 0x127   :  { %132 = vsyncpa [#allocation4], 1 }

</bundles_post_ra>
